<compile_context>
chip_gen: v5e
topology: v5e:2x2
jax: 0.10.0
libtpu: 0.0.40
codegen_flags: <defaults>
</compile_context>

<pallas_src>
import functools

import jax
import jax.numpy as jnp
from jax.experimental import pallas as pl
from jax.experimental.pallas import tpu as pltpu


# ----------------------------------------------------------------------------
# Kernel: one grid step per batch element.
#   pt_ref : (K_pad, HW)   bf16  transposed im2col patches for this sample
#   cw_ref : (feat, K_pad) bf16  conv weight (flattened taps)
#   cb_ref : (feat, 1)     f32   conv bias
#   linear weights stored (in, out), biases (1, out), all f32
#   out_ref: (1, 8, 128)   f32   packed output tile, row 0 = [y | y_softmax | d]
# ----------------------------------------------------------------------------
def dann_kernel(pt_ref, cw_ref, cb_ref,
                bn_w_ref, bn_b_ref, cl_w_ref, cl_b_ref,
                d1_w_ref, d1_b_ref, d2_w_ref, d2_b_ref,
                dw_ref, db_ref,
                out_ref, *, num_classes):
    # ---- backbone: 3x3 conv as a single lane-dense MXU matmul (bf16 -> f32 acc)
    conv_t = jnp.dot(cw_ref[...], pt_ref[...],
                     preferred_element_type=jnp.float32)          # (feat, HW)
    conv_t = jnp.maximum(conv_t + cb_ref[...], 0.0)               # lane-dense VPU
    # global average pool = lane reduction, then a tiny transpose to a row vector
    feat = jnp.mean(conv_t, axis=1, keepdims=True).T              # (1, feat)

    # ---- bottleneck linear
    x = jnp.dot(feat, bn_w_ref[...],
                preferred_element_type=jnp.float32) + bn_b_ref[...]   # (1, bottleneck)

    # ---- classifier + softmax(dim=1)
    y = jnp.dot(x, cl_w_ref[...],
                preferred_element_type=jnp.float32) + cl_b_ref[...]   # (1, num_classes)
    y_max = jnp.max(y, axis=1, keepdims=True)
    e = jnp.exp(y - y_max)
    y_soft = e * pl.reciprocal(jnp.sum(e, axis=1, keepdims=True), approx=True)

    # ---- GRL: identity in forward; dropout: eval-mode identity
    xd = jnp.maximum(
        jnp.dot(x, d1_w_ref[...], preferred_element_type=jnp.float32) + d1_b_ref[...],
        0.0)
    xd = jnp.maximum(
        jnp.dot(xd, d2_w_ref[...], preferred_element_type=jnp.float32) + d2_b_ref[...],
        0.0)
    d_logit = jnp.dot(xd, dw_ref[...],
                      preferred_element_type=jnp.float32) + db_ref[...]   # (1, 1)
    d = pl.reciprocal(1.0 + jnp.exp(-d_logit), approx=True)

    # ---- pack y | y_softmax | d into one lane-dense (8, 128) tile (row 0)
    nc = num_classes
    out_ref[...] = jnp.zeros_like(out_ref)
    out_ref[:, 0:1, 0:nc] = y.reshape(1, 1, nc)
    out_ref[:, 0:1, nc:2 * nc] = y_soft.reshape(1, 1, nc)
    out_ref[:, 0:1, 2 * nc:2 * nc + 1] = d.reshape(1, 1, 1)


# ----------------------------------------------------------------------------
# Wrapper: wrapper-side im2col (transposed so the kernel is lane-dense),
# batch-parallel grid, packed output slab sliced back into (y, y_softmax, d).
# ----------------------------------------------------------------------------
@functools.partial(jax.jit, static_argnames=("num_classes",))
def dann_forward(x_nchw, params, *, num_classes):
    B, C, H, W = x_nchw.shape
    HW = H * W
    assert HW % 128 == 0, "H*W must be a multiple of 128 for this lane tiling"
    assert 2 * num_classes + 1 <= 128

    feat_dim = params["conv_w"].shape[0]
    bottleneck = params["bn_w"].shape[1]
    num_hidden = params["d1_w"].shape[1]

    # im2col, transposed to (K, B*HW): K order = (tap, channel), column order =
    # (batch, h, w).  Pure layout plumbing in XLA, no hot compute.
    xp = jnp.pad(x_nchw, ((0, 0), (0, 0), (1, 1), (1, 1)))
    taps = [xp[:, :, i:i + H, j:j + W] for i in range(3) for j in range(3)]
    pt = jnp.stack(taps, axis=0)                  # (9, B, C, H, W)
    pt = pt.transpose(0, 2, 1, 3, 4)              # (9, C, B, H, W)
    pt = pt.reshape(9 * C, B * HW)

    K = 9 * C
    K_pad = ((K + 15) // 16) * 16                 # bf16 sublane-tile aligned
    pt = jnp.pad(pt, ((0, K_pad - K), (0, 0))).astype(jnp.bfloat16)
    cw = params["conv_w"].reshape(feat_dim, K)
    cw = jnp.pad(cw, ((0, 0), (0, K_pad - K))).astype(jnp.bfloat16)

    inputs = [pt, cw, params["conv_b"],
              params["bn_w"], params["bn_b"], params["cl_w"], params["cl_b"],
              params["d1_w"], params["d1_b"], params["d2_w"], params["d2_b"],
              params["disc_w"], params["disc_b"]]

    in_specs = [pl.BlockSpec((K_pad, HW), lambda b: (0, b))]
    # Weights/biases: full-array blocks with a constant index_map (loaded once).
    in_specs += [pl.BlockSpec(a.shape, lambda b: (0, 0)) for a in inputs[1:]]
    out_specs = pl.BlockSpec((1, 8, 128), lambda b: (b, 0, 0))

    flops = (2 * B * HW * K_pad * feat_dim + B * HW * feat_dim
             + 2 * B * (feat_dim * bottleneck + bottleneck * num_classes
                        + bottleneck * num_hidden + num_hidden * num_hidden
                        + num_hidden))
    bytes_accessed = int(sum(a.size * a.dtype.itemsize for a in inputs)) + B * 8 * 128 * 4
    transcendentals = B * (num_classes + 3)

    out = pl.pallas_call(
        functools.partial(dann_kernel, num_classes=num_classes),
        grid=(B,),
        in_specs=in_specs,
        out_specs=out_specs,
        out_shape=jax.ShapeDtypeStruct((B, 8, 128), jnp.float32),
        compiler_params=pltpu.CompilerParams(
            dimension_semantics=("parallel",),
            vmem_limit_bytes=32 * 1024 * 1024),
        cost_estimate=pl.CostEstimate(flops=int(flops),
                                      transcendentals=int(transcendentals),
                                      bytes_accessed=int(bytes_accessed)),
    )(*inputs)

    nc = num_classes
    y = out[:, 0, 0:nc]
    y_softmax = out[:, 0, nc:2 * nc]
    d = out[:, 0, 2 * nc:2 * nc + 1]
    return y, y_softmax, d


# ----------------------------------------------------------------------------
# Deterministic parameter init, matching the PyTorch __init__ distributions
# (synthetic backbone weights have no PyTorch counterpart; Linear weights are
# stored as (in, out) so x @ W matches PyTorch's x @ W.T).
# ----------------------------------------------------------------------------
def init_params(key, *, in_ch, feat_dim, bottleneck, num_hidden, num_classes):
    ks = jax.random.split(key, 7)
    conv_w = jax.random.normal(ks[0], (feat_dim, 3, 3, in_ch), jnp.float32) * 0.05
    conv_b = jax.random.normal(ks[1], (feat_dim, 1), jnp.float32) * 0.05

    bn_w = jax.random.normal(ks[2], (feat_dim, bottleneck), jnp.float32) * 0.005
    bn_b = jnp.full((1, bottleneck), 0.1, jnp.float32)
    cl_w = jax.random.normal(ks[3], (bottleneck, num_classes), jnp.float32) * 0.01
    cl_b = jnp.zeros((1, num_classes), jnp.float32)
    d1_w = jax.random.normal(ks[4], (bottleneck, num_hidden), jnp.float32) * 0.01
    d1_b = jnp.zeros((1, num_hidden), jnp.float32)
    d2_w = jax.random.normal(ks[5], (num_hidden, num_hidden), jnp.float32) * 0.01
    d2_b = jnp.zeros((1, num_hidden), jnp.float32)
    disc_w = jax.random.normal(ks[6], (num_hidden, 1), jnp.float32) * 0.3
    disc_b = jnp.zeros((1, 1), jnp.float32)

    return dict(conv_w=conv_w, conv_b=conv_b, bn_w=bn_w, bn_b=bn_b,
                cl_w=cl_w, cl_b=cl_b, d1_w=d1_w, d1_b=d1_b,
                d2_w=d2_w, d2_b=d2_b, disc_w=disc_w, disc_b=disc_b)


# ----------------------------------------------------------------------------
# Plain-JAX f32 reference (uses a real convolution, independently validating
# the im2col / weight-flattening layout used by the kernel).
# ----------------------------------------------------------------------------
def reference_forward(x_nchw, params):
    conv = jax.lax.conv_general_dilated(
        x_nchw, params["conv_w"],
        window_strides=(1, 1), padding=((1, 1), (1, 1)),
        dimension_numbers=("NCHW", "OHWI", "NCHW"))
    conv = jnp.maximum(conv + params["conv_b"].reshape(1, -1, 1, 1), 0.0)
    feat = conv.mean(axis=(2, 3))                               # (B, feat_dim)
    x = feat @ params["bn_w"] + params["bn_b"]
    y = x @ params["cl_w"] + params["cl_b"]
    ys = jax.nn.softmax(y, axis=1)
    xd = jnp.maximum(x @ params["d1_w"] + params["d1_b"], 0.0)
    xd = jnp.maximum(xd @ params["d2_w"] + params["d2_b"], 0.0)
    d = jax.nn.sigmoid(xd @ params["disc_w"] + params["disc_b"])
    return y, ys, d


if __name__ == "__main__":
    B, C, H, W = 2, 4, 16, 16
    FEAT_DIM, BOTTLENECK, NUM_HIDDEN, NUM_CLASSES = 8, 32, 32, 4

    key = jax.random.PRNGKey(0)
    k_x, k_p = jax.random.split(key)
    x = jax.random.normal(k_x, (B, C, H, W), jnp.float32)
    params = init_params(k_p, in_ch=C, feat_dim=FEAT_DIM, bottleneck=BOTTLENECK,
                         num_hidden=NUM_HIDDEN, num_classes=NUM_CLASSES)

    y, y_softmax, d = dann_forward(x, params, num_classes=NUM_CLASSES)
    jax.block_until_ready((y, y_softmax, d))

    y_ref, ys_ref, d_ref = reference_forward(x, params)
    assert jnp.allclose(y, y_ref, rtol=5e-3, atol=5e-3)
    assert jnp.allclose(y_softmax, ys_ref, rtol=5e-3, atol=5e-3)
    assert jnp.allclose(d, d_ref, rtol=5e-3, atol=5e-3)

    print("KERNEL_OK")
</pallas_src>

<mosaic_0001>
module attributes {stable_mosaic.version = 11 : i64} {
  func.func @dann_kernel(%arg0: i32, %arg1: memref<48x256xbf16, #tpu.memory_space<vmem>>, %arg2: memref<8x48xbf16, #tpu.memory_space<vmem>>, %arg3: memref<8x1xf32, #tpu.memory_space<vmem>>, %arg4: memref<8x32xf32, #tpu.memory_space<vmem>>, %arg5: memref<1x32xf32, #tpu.memory_space<vmem>>, %arg6: memref<32x4xf32, #tpu.memory_space<vmem>>, %arg7: memref<1x4xf32, #tpu.memory_space<vmem>>, %arg8: memref<32x32xf32, #tpu.memory_space<vmem>>, %arg9: memref<1x32xf32, #tpu.memory_space<vmem>>, %arg10: memref<32x32xf32, #tpu.memory_space<vmem>>, %arg11: memref<1x32xf32, #tpu.memory_space<vmem>>, %arg12: memref<32x1xf32, #tpu.memory_space<vmem>>, %arg13: memref<1x1xf32, #tpu.memory_space<vmem>>, %arg14: memref<1x8x128xf32, #tpu.memory_space<vmem>>) attributes {dimension_semantics = [#tpu.dimension_semantics<parallel>], iteration_bounds = array<i64: 2>, scalar_prefetch = 0 : i64, scratch_operands = 0 : i64, tpu.core_type = #tpu.core_type<tc>, window_params = [{transform_indices = @transform_0, window_bounds = array<i64: 48, 256>}, {pipeline_mode = #tpu.pipeline_mode<synchronous>, transform_indices = @transform_1, window_bounds = array<i64: 8, 48>}, {pipeline_mode = #tpu.pipeline_mode<synchronous>, transform_indices = @transform_2, window_bounds = array<i64: 8, 1>}, {pipeline_mode = #tpu.pipeline_mode<synchronous>, transform_indices = @transform_3, window_bounds = array<i64: 8, 32>}, {pipeline_mode = #tpu.pipeline_mode<synchronous>, transform_indices = @transform_4, window_bounds = array<i64: 1, 32>}, {pipeline_mode = #tpu.pipeline_mode<synchronous>, transform_indices = @transform_5, window_bounds = array<i64: 32, 4>}, {pipeline_mode = #tpu.pipeline_mode<synchronous>, transform_indices = @transform_6, window_bounds = array<i64: 1, 4>}, {pipeline_mode = #tpu.pipeline_mode<synchronous>, transform_indices = @transform_7, window_bounds = array<i64: 32, 32>}, {pipeline_mode = #tpu.pipeline_mode<synchronous>, transform_indices = @transform_8, window_bounds = array<i64: 1, 32>}, {pipeline_mode = #tpu.pipeline_mode<synchronous>, transform_indices = @transform_9, window_bounds = array<i64: 32, 32>}, {pipeline_mode = #tpu.pipeline_mode<synchronous>, transform_indices = @transform_10, window_bounds = array<i64: 1, 32>}, {pipeline_mode = #tpu.pipeline_mode<synchronous>, transform_indices = @transform_11, window_bounds = array<i64: 32, 1>}, {pipeline_mode = #tpu.pipeline_mode<synchronous>, transform_indices = @transform_12, window_bounds = array<i64: 1, 1>}, {transform_indices = @transform_13, window_bounds = array<i64: 1, 8, 128>}]} {
    %c0 = arith.constant 0 : index
    %c0_0 = arith.constant 0 : index
    %0 = vector.load %arg2[%c0, %c0_0] : memref<8x48xbf16, #tpu.memory_space<vmem>>, vector<8x48xbf16>
    %c0_1 = arith.constant 0 : index
    %c0_2 = arith.constant 0 : index
    %1 = vector.load %arg1[%c0_1, %c0_2] : memref<48x256xbf16, #tpu.memory_space<vmem>>, vector<48x256xbf16>
    %cst = arith.constant dense<0.000000e+00> : vector<8x256xf32>
    %2 = tpu.matmul %0, %1, %cst {dimension_numbers = #tpu.dot_dimension_numbers<[1], [0], [0], [1], [0, 0, 1, 1], [], []>} : vector<8x48xbf16>, vector<48x256xbf16>, vector<8x256xf32> -> vector<8x256xf32>
    %c0_3 = arith.constant 0 : index
    %c0_4 = arith.constant 0 : index
    %3 = vector.load %arg3[%c0_3, %c0_4] : memref<8x1xf32, #tpu.memory_space<vmem>>, vector<8x1xf32>
    %4 = vector.broadcast %3 : vector<8x1xf32> to vector<8x256xf32>
    %5 = arith.addf %2, %4 : vector<8x256xf32>
    %cst_5 = arith.constant 0.000000e+00 : f32
    %6 = vector.broadcast %cst_5 : f32 to vector<8x256xf32>
    %7 = arith.maximumf %5, %6 : vector<8x256xf32>
    %cst_6 = arith.constant dense<0.000000e+00> : vector<8xf32>
    %8 = vector.multi_reduction <add>, %7, %cst_6 [1] : vector<8x256xf32> to vector<8xf32>
    %9 = vector.shape_cast %8 : vector<8xf32> to vector<8x1xf32>
    %cst_7 = arith.constant 2.560000e+02 : f32
    %10 = vector.broadcast %cst_7 : f32 to vector<8x1xf32>
    %11 = arith.divf %9, %10 : vector<8x1xf32>
    %12 = tpu.transpose %11, [1, 0] : vector<8x1xf32> -> vector<1x8xf32>
    %c0_8 = arith.constant 0 : index
    %c0_9 = arith.constant 0 : index
    %13 = vector.load %arg4[%c0_8, %c0_9] : memref<8x32xf32, #tpu.memory_space<vmem>>, vector<8x32xf32>
    %cst_10 = arith.constant dense<0.000000e+00> : vector<1x32xf32>
    %14 = tpu.matmul %12, %13, %cst_10 {dimension_numbers = #tpu.dot_dimension_numbers<[1], [0], [0], [1], [0, 0, 1, 1], [], []>} : vector<1x8xf32>, vector<8x32xf32>, vector<1x32xf32> -> vector<1x32xf32>
    %c0_11 = arith.constant 0 : index
    %c0_12 = arith.constant 0 : index
    %15 = vector.load %arg5[%c0_11, %c0_12] : memref<1x32xf32, #tpu.memory_space<vmem>>, vector<1x32xf32>
    %16 = arith.addf %14, %15 : vector<1x32xf32>
    %c0_13 = arith.constant 0 : index
    %c0_14 = arith.constant 0 : index
    %17 = vector.load %arg6[%c0_13, %c0_14] : memref<32x4xf32, #tpu.memory_space<vmem>>, vector<32x4xf32>
    %cst_15 = arith.constant dense<0.000000e+00> : vector<1x4xf32>
    %18 = tpu.matmul %16, %17, %cst_15 {dimension_numbers = #tpu.dot_dimension_numbers<[1], [0], [0], [1], [0, 0, 1, 1], [], []>} : vector<1x32xf32>, vector<32x4xf32>, vector<1x4xf32> -> vector<1x4xf32>
    %c0_16 = arith.constant 0 : index
    %c0_17 = arith.constant 0 : index
    %19 = vector.load %arg7[%c0_16, %c0_17] : memref<1x4xf32, #tpu.memory_space<vmem>>, vector<1x4xf32>
    %20 = arith.addf %18, %19 : vector<1x4xf32>
    %cst_18 = arith.constant dense<0xFF800000> : vector<1xf32>
    %21 = vector.multi_reduction <maximumf>, %20, %cst_18 [1] : vector<1x4xf32> to vector<1xf32>
    %22 = vector.shape_cast %21 : vector<1xf32> to vector<1x1xf32>
    %23 = vector.broadcast %22 : vector<1x1xf32> to vector<1x4xf32>
    %24 = arith.subf %20, %23 : vector<1x4xf32>
    %25 = math.exp %24 : vector<1x4xf32>
    %cst_19 = arith.constant dense<0.000000e+00> : vector<1xf32>
    %26 = vector.multi_reduction <add>, %25, %cst_19 [1] : vector<1x4xf32> to vector<1xf32>
    %27 = vector.shape_cast %26 : vector<1xf32> to vector<1x1xf32>
    %28 = tpu.reciprocal %27 {approx = true} : vector<1x1xf32> -> vector<1x1xf32>
    %29 = vector.broadcast %28 : vector<1x1xf32> to vector<1x4xf32>
    %30 = arith.mulf %25, %29 : vector<1x4xf32>
    %c0_20 = arith.constant 0 : index
    %c0_21 = arith.constant 0 : index
    %31 = vector.load %arg8[%c0_20, %c0_21] : memref<32x32xf32, #tpu.memory_space<vmem>>, vector<32x32xf32>
    %cst_22 = arith.constant dense<0.000000e+00> : vector<1x32xf32>
    %32 = tpu.matmul %16, %31, %cst_22 {dimension_numbers = #tpu.dot_dimension_numbers<[1], [0], [0], [1], [0, 0, 1, 1], [], []>} : vector<1x32xf32>, vector<32x32xf32>, vector<1x32xf32> -> vector<1x32xf32>
    %c0_23 = arith.constant 0 : index
    %c0_24 = arith.constant 0 : index
    %33 = vector.load %arg9[%c0_23, %c0_24] : memref<1x32xf32, #tpu.memory_space<vmem>>, vector<1x32xf32>
    %34 = arith.addf %32, %33 : vector<1x32xf32>
    %cst_25 = arith.constant 0.000000e+00 : f32
    %35 = vector.broadcast %cst_25 : f32 to vector<1x32xf32>
    %36 = arith.maximumf %34, %35 : vector<1x32xf32>
    %c0_26 = arith.constant 0 : index
    %c0_27 = arith.constant 0 : index
    %37 = vector.load %arg10[%c0_26, %c0_27] : memref<32x32xf32, #tpu.memory_space<vmem>>, vector<32x32xf32>
    %cst_28 = arith.constant dense<0.000000e+00> : vector<1x32xf32>
    %38 = tpu.matmul %36, %37, %cst_28 {dimension_numbers = #tpu.dot_dimension_numbers<[1], [0], [0], [1], [0, 0, 1, 1], [], []>} : vector<1x32xf32>, vector<32x32xf32>, vector<1x32xf32> -> vector<1x32xf32>
    %c0_29 = arith.constant 0 : index
    %c0_30 = arith.constant 0 : index
    %39 = vector.load %arg11[%c0_29, %c0_30] : memref<1x32xf32, #tpu.memory_space<vmem>>, vector<1x32xf32>
    %40 = arith.addf %38, %39 : vector<1x32xf32>
    %cst_31 = arith.constant 0.000000e+00 : f32
    %41 = vector.broadcast %cst_31 : f32 to vector<1x32xf32>
    %42 = arith.maximumf %40, %41 : vector<1x32xf32>
    %c0_32 = arith.constant 0 : index
    %c0_33 = arith.constant 0 : index
    %43 = vector.load %arg12[%c0_32, %c0_33] : memref<32x1xf32, #tpu.memory_space<vmem>>, vector<32x1xf32>
    %cst_34 = arith.constant dense<0.000000e+00> : vector<1x1xf32>
    %44 = tpu.matmul %42, %43, %cst_34 {dimension_numbers = #tpu.dot_dimension_numbers<[1], [0], [0], [1], [0, 0, 1, 1], [], []>} : vector<1x32xf32>, vector<32x1xf32>, vector<1x1xf32> -> vector<1x1xf32>
    %c0_35 = arith.constant 0 : index
    %c0_36 = arith.constant 0 : index
    %45 = vector.load %arg13[%c0_35, %c0_36] : memref<1x1xf32, #tpu.memory_space<vmem>>, vector<1x1xf32>
    %46 = arith.addf %44, %45 : vector<1x1xf32>
    %cst_37 = arith.constant 0.000000e+00 : f32
    %47 = vector.broadcast %cst_37 : f32 to vector<1x1xf32>
    %48 = arith.subf %47, %46 : vector<1x1xf32>
    %49 = math.exp %48 : vector<1x1xf32>
    %cst_38 = arith.constant 1.000000e+00 : f32
    %50 = vector.broadcast %cst_38 : f32 to vector<1x1xf32>
    %51 = arith.addf %50, %49 : vector<1x1xf32>
    %52 = tpu.reciprocal %51 {approx = true} : vector<1x1xf32> -> vector<1x1xf32>
    %cst_39 = arith.constant 0.000000e+00 : f32
    %53 = vector.broadcast %cst_39 : f32 to vector<1x8x128xf32>
    %c0_40 = arith.constant 0 : index
    %c0_41 = arith.constant 0 : index
    %c0_42 = arith.constant 0 : index
    %54 = vector.load %arg14[%c0_40, %c0_41, %c0_42] : memref<1x8x128xf32, #tpu.memory_space<vmem>>, vector<1x8x128xf32>
    tpu.vector_store %arg14[%c0_40, %c0_41, %c0_42], %53 {strides = array<i32>} : memref<1x8x128xf32, #tpu.memory_space<vmem>>, vector<1x8x128xf32>,
    %55 = vector.shape_cast %20 : vector<1x4xf32> to vector<1x1x4xf32>
    %c0_43 = arith.constant 0 : index
    %c0_44 = arith.constant 0 : index
    %c0_45 = arith.constant 0 : index
    %56 = vector.load %arg14[%c0_43, %c0_44, %c0_45] : memref<1x8x128xf32, #tpu.memory_space<vmem>>, vector<1x1x4xf32>
    tpu.vector_store %arg14[%c0_43, %c0_44, %c0_45], %55 {strides = array<i32>} : memref<1x8x128xf32, #tpu.memory_space<vmem>>, vector<1x1x4xf32>,
    %57 = vector.shape_cast %30 : vector<1x4xf32> to vector<1x1x4xf32>
    %c0_46 = arith.constant 0 : index
    %c0_47 = arith.constant 0 : index
    %c4 = arith.constant 4 : index
    %58 = vector.load %arg14[%c0_46, %c0_47, %c4] : memref<1x8x128xf32, #tpu.memory_space<vmem>>, vector<1x1x4xf32>
    tpu.vector_store %arg14[%c0_46, %c0_47, %c4], %57 {strides = array<i32>} : memref<1x8x128xf32, #tpu.memory_space<vmem>>, vector<1x1x4xf32>,
    %59 = vector.shape_cast %52 : vector<1x1xf32> to vector<1x1x1xf32>
    %c0_48 = arith.constant 0 : index
    %c0_49 = arith.constant 0 : index
    %c8 = arith.constant 8 : index
    %60 = vector.load %arg14[%c0_48, %c0_49, %c8] : memref<1x8x128xf32, #tpu.memory_space<vmem>>, vector<1x1x1xf32>
    tpu.vector_store %arg14[%c0_48, %c0_49, %c8], %59 {strides = array<i32>} : memref<1x8x128xf32, #tpu.memory_space<vmem>>, vector<1x1x1xf32>,
    return
  }
  func.func @transform_0(%arg0: i32) -> (i32, i32) {
    %c0_i32 = arith.constant 0 : i32
    %c0_i32_0 = arith.constant 0 : i32
    return %c0_i32, %arg0 : i32, i32
  }
  func.func @transform_1(%arg0: i32) -> (i32, i32) {
    %c0_i32 = arith.constant 0 : i32
    %c0_i32_0 = arith.constant 0 : i32
    %c0_i32_1 = arith.constant 0 : i32
    return %c0_i32, %c0_i32_0 : i32, i32
  }
  func.func @transform_2(%arg0: i32) -> (i32, i32) {
    %c0_i32 = arith.constant 0 : i32
    %c0_i32_0 = arith.constant 0 : i32
    %c0_i32_1 = arith.constant 0 : i32
    return %c0_i32, %c0_i32_0 : i32, i32
  }
  func.func @transform_3(%arg0: i32) -> (i32, i32) {
    %c0_i32 = arith.constant 0 : i32
    %c0_i32_0 = arith.constant 0 : i32
    %c0_i32_1 = arith.constant 0 : i32
    return %c0_i32, %c0_i32_0 : i32, i32
  }
  func.func @transform_4(%arg0: i32) -> (i32, i32) {
    %c0_i32 = arith.constant 0 : i32
    %c0_i32_0 = arith.constant 0 : i32
    %c0_i32_1 = arith.constant 0 : i32
    return %c0_i32, %c0_i32_0 : i32, i32
  }
  func.func @transform_5(%arg0: i32) -> (i32, i32) {
    %c0_i32 = arith.constant 0 : i32
    %c0_i32_0 = arith.constant 0 : i32
    %c0_i32_1 = arith.constant 0 : i32
    return %c0_i32, %c0_i32_0 : i32, i32
  }
  func.func @transform_6(%arg0: i32) -> (i32, i32) {
    %c0_i32 = arith.constant 0 : i32
    %c0_i32_0 = arith.constant 0 : i32
    %c0_i32_1 = arith.constant 0 : i32
    return %c0_i32, %c0_i32_0 : i32, i32
  }
  func.func @transform_7(%arg0: i32) -> (i32, i32) {
    %c0_i32 = arith.constant 0 : i32
    %c0_i32_0 = arith.constant 0 : i32
    %c0_i32_1 = arith.constant 0 : i32
    return %c0_i32, %c0_i32_0 : i32, i32
  }
  func.func @transform_8(%arg0: i32) -> (i32, i32) {
    %c0_i32 = arith.constant 0 : i32
    %c0_i32_0 = arith.constant 0 : i32
    %c0_i32_1 = arith.constant 0 : i32
    return %c0_i32, %c0_i32_0 : i32, i32
  }
  func.func @transform_9(%arg0: i32) -> (i32, i32) {
    %c0_i32 = arith.constant 0 : i32
    %c0_i32_0 = arith.constant 0 : i32
    %c0_i32_1 = arith.constant 0 : i32
    return %c0_i32, %c0_i32_0 : i32, i32
  }
  func.func @transform_10(%arg0: i32) -> (i32, i32) {
    %c0_i32 = arith.constant 0 : i32
    %c0_i32_0 = arith.constant 0 : i32
    %c0_i32_1 = arith.constant 0 : i32
    return %c0_i32, %c0_i32_0 : i32, i32
  }
  func.func @transform_11(%arg0: i32) -> (i32, i32) {
    %c0_i32 = arith.constant 0 : i32
    %c0_i32_0 = arith.constant 0 : i32
    %c0_i32_1 = arith.constant 0 : i32
    return %c0_i32, %c0_i32_0 : i32, i32
  }
  func.func @transform_12(%arg0: i32) -> (i32, i32) {
    %c0_i32 = arith.constant 0 : i32
    %c0_i32_0 = arith.constant 0 : i32
    %c0_i32_1 = arith.constant 0 : i32
    return %c0_i32, %c0_i32_0 : i32, i32
  }
  func.func @transform_13(%arg0: i32) -> (i32, i32, i32) {
    %c0_i32 = arith.constant 0 : i32
    %c0_i32_0 = arith.constant 0 : i32
    %c0_i32_1 = arith.constant 0 : i32
    return %arg0, %c0_i32, %c0_i32_0 : i32, i32, i32
  }
}

</mosaic_0001>

<bundles_post_ra>
// kernel: dann_forward.1
= control target key start
LH: loop header
LB: loop body
LE: loop exit
PB: predicated region body
PF: predicated region fallthrough
CT: control target
= control target key end

     0   :  { %s1173_s0 = inlined_call_operand.vmem [shape: bf16[48,512], index: 0, kind: input, shape index: {}]   ;;  %s1174_s1 = inlined_call_operand.vmem [shape: bf16[8,48], index: 1, kind: input, shape index: {}]   ;;  %s1175_s2 = inlined_call_operand.vmem [shape: f32[8,1], index: 2, kind: input, shape index: {}]   ;;  %s1176_s3 = inlined_call_operand.vmem [shape: f32[8,32], index: 3, kind: input, shape index: {}]   ;;  %s1177_s4 = inlined_call_operand.vmem [shape: f32[1,32], index: 4, kind: input, shape index: {}]   ;;  %s1178_s5 = inlined_call_operand.vmem [shape: f32[32,4], index: 5, kind: input, shape index: {}]   ;;  %s1179_s6 = inlined_call_operand.vmem [shape: f32[1,4], index: 6, kind: input, shape index: {}]   ;;  %s1180_s7 = inlined_call_operand.vmem [shape: f32[32,32], index: 7, kind: input, shape index: {}]   ;;  %s1181_s8 = inlined_call_operand.vmem [shape: f32[1,32], index: 8, kind: input, shape index: {}]   ;;  %s1182_s9 = inlined_call_operand.vmem [shape: f32[32,32], index: 9, kind: input, shape index: {}]   ;;  %s1183_s10 = inlined_call_operand.vmem [shape: f32[1,32], index: 10, kind: input, shape index: {}]   ;;  %s1184_s11 = inlined_call_operand.vmem [shape: f32[32,1], index: 11, kind: input, shape index: {}]   ;;  %s1185_s12 = inlined_call_operand.<no memory space> [shape: f32[1,1], index: 12, kind: input, shape index: {}]   ;;  %s1186_s13 = inlined_call_operand.vmem [shape: f32[2,8,128], index: 13, kind: output, shape index: {}]  }
   0x1   :  { %v18_v0 = vstv %s1185_s12 }
   0x2   :  { %19 = vst [vmem:[#allocation2] sm:$0x1] %v18_v0 }
   0x3   :  { %s1037_s27 = smov 0   ;;  %s1039_s28 = smov 0  }
   0x4   :  { %s1041_s29 = smov 0  }
   0x5 LB: > { %s845_s12 = sadd.s32 4294967295, %s957_s29   ;;  %s1054_s30 = sadd.s32 1, %s957_s29   ;;  %s957_s29 = sphi %s1041_s29, %s1189_s29   ;;  %s953_s28 = sphi %s1039_s28, %s1188_s28   ;;  %s949_s27 = sphi %s1037_s27, %s1187_s27  }
   0x6   : > { %s29_s14 = ssub.s32 %s957_s29, %s1054_s30  ;;  %s32_s15 = sadd.s32 1, %s953_s28 }
   0x7   : > { %p30_p0 = scmp.eq.s32.totalorder %s29_s14, 0  ;;  %p39_p1 = scmp.ne.s32.totalorder %s953_s28, %s949_s27 }
   0x8   : > { %p40_p2 = scmp.eq.s32.totalorder %s957_s29, 0  ;;  %p848_p4 = scmp.ge.s32.totalorder %s957_s29, 2 }
   0x9   : > { %s1063_s16 = scalar_select %p30_p0, %s953_s28, %s32_s15  }
   0xa   : > { %p41_p3 = por %p40_p2, %p39_p1  ;;  %379 = sbr.rel (%p848_p4) target bundleno = 25 (0x19), region = 64 }
   0xf   : > { %382 = sbr.rel (!%p41_p3) target bundleno = 25 (0x19), region = 68  ;;  %s384_s17 = sand.u32 (%p41_p3), 1, %s953_s28  }
  0x10   : > { %s886_s18 = sshll.u32 (%p41_p3), %s957_s29, 3  ;;  %s893_s19 = smul.u32 (%p41_p3), 48, %s384_s17 }
  0x11   : > { %s389_s22 = scalar_lea.vmem (%p41_p3), %s1173_s0, %s886_s18 }
  0x12   : > { %v428_v1 = vld [vmem:[%s389_s22] sm:$0xff] (%p41_p3)  ;;  %v430_v2 = vld [vmem:[%s389_s22 + $0x10] sm:$0xff] (%p41_p3)  ;;  %s386_s23 = scalar_lea.vmem (%p41_p3), [#allocation3], %s893_s19 }
  0x13   : > { %v432_v3 = vld [vmem:[%s389_s22 + $0x20] sm:$0xff] (%p41_p3)  ;;  %429 = vst [vmem:[%s386_s23] sm:$0xff] (%p41_p3), %v428_v1  ;;  %v434_v4 = vld [vmem:[%s389_s22 + $0x30] sm:$0xff] (%p41_p3) }
  0x14   : > { %431 = vst [vmem:[%s386_s23 + $0x8] sm:$0xff] %v430_v2  ;;  %v436_v5 = vld [vmem:[%s389_s22 + $0x40] sm:$0xff]  ;;  %v438_v6 = vld [vmem:[%s389_s22 + $0x50] sm:$0xff] }
  0x15   : > { %433 = vst [vmem:[%s386_s23 + $0x10] sm:$0xff] %v432_v3 }
  0x16   : > { %435 = vst [vmem:[%s386_s23 + $0x18] sm:$0xff] %v434_v4 }
  0x17   : > { %437 = vst [vmem:[%s386_s23 + $0x20] sm:$0xff] %v436_v5 }
  0x18   : > { %439 = vst [vmem:[%s386_s23 + $0x28] sm:$0xff] %v438_v6 }
  0x19 PF: > { %p851_p5 = scmp.ge.s32.totalorder %s957_s29, 1  ;;  %p444_p6 = scmp.lt.s32.totalorder %s957_s29, 3 }
  0x1b   : > { %p445_p7 = pnand %p851_p5, %p444_p6 }
  0x1c   : > { %s451_s24 = sand.u32 (!%p445_p7), 1, %s949_s27   ;;  %p494_p8 = scmp.lt.s32.totalorder (!%p445_p7), %s845_s12, 1 }
  0x1d   : > { %448 = sbr.rel (%p445_p7) target bundleno = 1116 (0x45c), region = 106  ;;  %s962_s29 = smov (!%p445_p7), 4  }
  0x1e   : > { %s894_s14 = smul.u32 (!%p445_p7), 48, %s451_s24 }
  0x20   : > { %s453_s15 = scalar_lea.vmem (!%p445_p7), [#allocation3], %s894_s14 }
  0x22   : > { %v506_v7 = vld [vmem:[%s1175_s2] sm:$0xff]  ;;  %v959_v8 = vmov 0   ;;  %v892_v10 = vld [vmem:[%s453_s15 + $0x24] sm:$0xf0]  ;;  %v890_v15 = vld [vmem:[%s453_s15 + $0x14] sm:$0xf0] }
  0x23   : > { %924 = vset.pattern.permute.xlu0 %v959_v8  ;;  %v871_v9 = vld [vmem:[%s453_s15 + $0x20] sm:$0xf]  ;;  %v891_v11 = vld [vmem:[%s453_s15 + $0x24] sm:$0xf]  ;;  %v873_v13 = vld [vmem:[%s453_s15 + $0x28] sm:$0xf0] }
  0x24   : > { %509 = vperm.xlu0 %924, %v506_v7   ;;  %v872_v12 = vor.u32 %v892_v10, %v871_v9  ;;  %v863_v14 = vld [vmem:[%s453_s15 + $0x10] sm:$0xf]  ;;  %v876_v16 = vor.u32 %v891_v11, %v873_v13  ;;  %v889_v17 = vld [vmem:[%s453_s15 + $0x14] sm:$0xf]  ;;  %v865_v18 = vld [vmem:[%s453_s15 + $0x18] sm:$0xf0] }
  0x25   : > { %v864_v19 = vor.u32 %v890_v15, %v863_v14  ;;  %v868_v20 = vor.u32 %v889_v17, %v865_v18  ;;  %v855_v21 = vld [vmem:[%s453_s15] sm:$0xf]  ;;  %v888_v22 = vld [vmem:[%s453_s15 + $0x4] sm:$0xf0]  ;;  %v887_v23 = vld [vmem:[%s453_s15 + $0x4] sm:$0xf] }
  0x26   : > { %551 = vmatpush.bf16.msra.mxu0 %v872_v12  ;;  %564 = vmatpush.bf16.msra.mxu1 %v876_v16  ;;  %v857_v24 = vld [vmem:[%s453_s15 + $0x8] sm:$0xf0]  ;;  %v856_v25 = vor.u32 %v888_v22, %v855_v21  ;;  %vm542_vm0 = vcmask 392192   ;;  %v960_v39 = vmov 256.0   ;;  %vm619_vm2 = vcmask 64512   ;;  %s1191_s12 = smov (!%p494_p8, %s845_s12), 1 }
  0x27   : > { %v860_v26 = vor.u32 %v887_v23, %v857_v24  ;;  %v499_v27 = vld [vmem:[%s1174_s1] sm:$0xf]  ;;  %925 = vrcp.f32 %v960_v39  ;;  %v687_v48 = vld [vmem:[%s1180_s7 + $0x18] sm:$0xff]  ;;  %v686_v50 = vld [vmem:[%s1180_s7 + $0x10] sm:$0xff]  ;;  %vm648_vm3 = vcmask 261120   ;;  %s852_s27 = sshll.u32 %s1191_s12, 3 }
  0x28   : > { %v617_v38 = vld [vmem:[%s1176_s3] sm:$0xff]  ;;  %v646_v49 = vld [vmem:[%s1178_s5 + $0x18] sm:$0xff]  ;;  %v645_v51 = vld [vmem:[%s1178_s5 + $0x10] sm:$0xff]  ;;  %s1125_s19 = scalar_lea.vmem %s1186_s13, %s852_s27  ;;  %v961_v63 = vmov 0.0   ;;  %vm672_vm4 = vcmask 24576   ;;  %s963_s12 = smov 8  }
  0x29   : > { %638 = vmatpush.msra.mxu2 %v617_v38  ;;  %664 = vmatpush.msra.mxu3 %v646_v49  ;;  %v685_v52 = vld [vmem:[%s1180_s7 + $0x8] sm:$0xff]  ;;  %v684_v55 = vld [vmem:[%s1180_s7] sm:$0xff]  ;;  %v713_v57 = vld [vmem:[%s1182_s9 + $0x18] sm:$0xff]  ;;  %772 = vst [vmem:[%s1125_s19] sm:$0xff] %v961_v63  ;;  %vm778_vm5 = vcmask 57376   ;;  %vm784_vm6 = vcmask 65600  }
  0x2a   : > { %552 = vmatpush.bf16.msra.mxu0 %v864_v19  ;;  %565 = vmatpush.bf16.msra.mxu1 %v868_v20  ;;  %v644_v54 = vld [vmem:[%s1178_s5 + $0x8] sm:$0xff]  ;;  %v643_v56 = vld [vmem:[%s1178_s5] sm:$0xff]  ;;  %v712_v58 = vld [vmem:[%s1182_s9 + $0x10] sm:$0xff] }
  0x2b   : > { %701 = vmatpush.msrb.mxu2 %v687_v48  ;;  %665 = vmatpush.msra.mxu3 %v645_v51  ;;  %v618_v59 = vld [vmem:[%s1177_s4] sm:$0x1]  ;;  %v711_v62 = vld [vmem:[%s1182_s9 + $0x8] sm:$0xff]  ;;  %v742_v9 = vld [vmem:[%s1184_s11 + $0x18] sm:$0xff] }
  0x2c   : > { %v710_v0 = vld [vmem:[%s1182_s9] sm:$0xff]  ;;  %v741_v10 = vld [vmem:[%s1184_s11 + $0x10] sm:$0xff]  ;;  %v740_v11 = vld [vmem:[%s1184_s11 + $0x8] sm:$0xff] }
  0x2d   : > { %v926_v40 = vpop.eup %925  ;;  %702 = vmatpush.msrb.mxu2 %v686_v50  ;;  %666 = vmatpush.msra.mxu3 %v644_v54  ;;  %v647_v1 = vld [vmem:[%s1179_s6] sm:$0x1] }
  0x2e   : > { %553 = vmatpush.bf16.msra.mxu0 %v856_v25  ;;  %566 = vmatpush.bf16.msra.mxu1 %v860_v26  ;;  %v578_v41 = vmul.f32 256.0, %v926_v40  ;;  %vm582_vm1 = vweird.f32 %v926_v40  ;;  %v688_v2 = vld [vmem:[%s1181_s8] sm:$0x1] }
  0x2f   : > { %703 = vmatpush.msrb.mxu2 %v685_v52  ;;  %667 = vmatpush.msra.mxu3 %v643_v56  ;;  %v739_v12 = vld [vmem:[%s1184_s11] sm:$0xff] }
  0x30   : > { %v579_v42 = vsub.f32 1.0, %v578_v41  ;;  %v714_v18 = vld [vmem:[%s1183_s10] sm:$0x1] }
  0x31   : > { %877 = vmatmul.msk.bf16.vlgmr.msra.gmra.mxu0 %vm542_vm0, %v499_v27  ;;  %878 = vmatmul.msk.bf16.vlgmr.msra.gmra.mxu1 %vm542_vm0, %v499_v27  ;;  %v743_v25 = vld [vmem:[#allocation2] sm:$0x1] }
  0x32   : > { %v580_v43 = vmul.f32 %v926_v40, %v579_v42  ;;  %704 = vmatpush.msrb.mxu2 %v684_v55  ;;  %730 = vmatpush.msrb.mxu3 %v713_v57 }
  0x34   : > { %v581_v44 = vadd.f32 %v926_v40, %v580_v43  ;;  %731 = vmatpush.msrb.mxu3 %v712_v58 }
  0x36   : > { %v583_v45 = vsel %vm582_vm1, %v926_v40, %v581_v44  ;;  %732 = vmatpush.msrb.mxu3 %v711_v62 }
  0x38   : > { %733 = vmatpush.msrb.mxu3 %v710_v0 }
  0x96   : > { %v510_v28 = vpop.permute.xlu0 %509 }
  0xae   : > { %v555_v29 = vpop.f32.mrf.mxu0  ;;  %v568_v31 = vpop.f32.mrf.mxu1 }
  0xaf   : > { %v556_v30 = vadd.f32 %v555_v29, %v510_v28  ;;  %v569_v32 = vadd.f32 %v568_v31, %v510_v28 }
  0xb1   : > { %v572_v33 = vmax.f32 %v556_v30, 0.0  ;;  %v573_v34 = vmax.f32 %v569_v32, 0.0 }
  0xb3   : > { %v574_v35 = vadd.f32 %v573_v34, %v572_v33 }
  0xb5   : > { %575 = vadd.xlane.f32.xlu0 %v574_v35 }
  0xb6   : > { %v557_v36 = vpop.f32.mrf.mxu0  ;;  %v570_v37 = vpop.f32.mrf.mxu1 }
 0x128   : > { %v576_v46 = vpop.xlane.xlu0 %575 }
 0x129   : > { %v584_v47 = vmul.f32 %v583_v45, %v576_v46 }
 0x12b   : > { %585 = vxpose.xlu1.b32.start.end [1/1] (short) (narrow) %v584_v47, 8 }
 0x1cf   : > { %v601_v53 = vpop.trf.xlu1 }
 0x1d0   : > { %879 = vmatmul.msk.f32.vlgmr.msra.gmra.mxu2 %vm619_vm2, %v601_v53 }
 0x1d1   : > { %759 = vmatpush.msra.mxu2 %v742_v9 }
 0x1d3   : > { %760 = vmatpush.msra.mxu2 %v741_v10 }
 0x1d5   : > { %761 = vmatpush.msra.mxu2 %v740_v11 }
 0x1d7   : > { %762 = vmatpush.msra.mxu2 %v739_v12 }
 0x253   : > { %v640_v60 = vpop.f32.mrf.mxu2 }
 0x254   : > { %v641_v61 = vadd.f32 %v640_v60, %v618_v59 }
 0x256   : > { %880 = vmatmul.msk.f32.vlgmr.msra.gmra.mxu3 %vm648_vm3, %v641_v61  ;;  %881 = vmatmul.msk.f32.vlgmr.msrb.gmra.mxu2 %vm648_vm3, %v641_v61 }
 0x2d9   : > { %v669_v3 = vpop.f32.mrf.mxu3  ;;  %v706_v4 = vpop.f32.mrf.mxu2 }
 0x2da   : > { %v670_v5 = vadd.f32 %v669_v3, %v647_v1  ;;  %v707_v6 = vadd.f32 %v706_v4, %v688_v2 }
 0x2dc   : > { %v709_v7 = vmax.f32 %v707_v6, 0.0  ;;  %v673_v8 = vsel %vm672_vm4, %v670_v5, -inf  ;;  %773 = vst.msk [vmem:[%s1125_s19] sm:$0x1] %vm672_vm4, %v670_v5 }
 0x2dd   : > { %674 = vmax.xlane.f32.xlu1 %v673_v8 }
 0x2de   : > { %882 = vmatmul.msk.f32.vlgmr.msrb.gmra.mxu3 %vm648_vm3, %v709_v7 }
 0x350   : > { %v675_v13 = vpop.xlane.xlu1 %674 }
 0x351   : > { %v676_v14 = vsub.f32 %v670_v5, %v675_v13 }
 0x353   : > { %v677_v15 = vmul.f32 1.442695, %v676_v14 }
 0x355   : > { %927 = vpow2.f32 %v677_v15 }
 0x35b   : > { %v928_v16 = vpop.eup %927 }
 0x35c   : > { %v679_v17 = vsel %vm672_vm4, %v928_v16, 0.0 }
 0x35d   : > { %680 = vadd.xlane.f32.xlu2 %v679_v17 }
 0x361   : > { %v735_v19 = vpop.f32.mrf.mxu3 }
 0x362   : > { %v736_v20 = vadd.f32 %v735_v19, %v714_v18 }
 0x364   : > { %v738_v21 = vmax.f32 %v736_v20, 0.0 }
 0x366   : > { %883 = vmatmul.msk.f32.vlgmr.msra.gmra.mxu2 %vm648_vm3, %v738_v21 }
 0x3d0   : > { %v681_v22 = vpop.xlane.xlu2 %680 }
 0x3d1   : > { %929 = vrcp.f32 %v681_v22 }
 0x3d7   : > { %v930_v23 = vpop.eup %929 }
 0x3d8   : > { %v683_v24 = vmul.f32 %v930_v23, %v928_v16 }
 0x3da   : > { %775 = vrot.lane.b32.xlu2 %v683_v24, %s962_s29 }
 0x3e9   : > { %v764_v26 = vpop.f32.mrf.mxu2 }
 0x3ea   : > { %v765_v27 = vadd.f32 %v764_v26, %v743_v25 }
 0x3ec   : > { %v767_v28 = vsub.f32 0.0, %v765_v27 }
 0x3ee   : > { %v768_v29 = vmul.f32 1.442695, %v767_v28 }
 0x3f0   : > { %931 = vpow2.f32 %v768_v29 }
 0x3f6   : > { %v932_v30 = vpop.eup %931 }
 0x3f7   : > { %v770_v31 = vadd.f32 1.0, %v932_v30 }
 0x3f9   : > { %933 = vrcp.f32 %v770_v31 }
 0x3ff   : > { %v934_v32 = vpop.eup %933 }
 0x400   : > { %781 = vrot.lane.b32.xlu2 %v934_v32, %s963_s12 }
 0x434   : > { %v776_v33 = vpop.permute.xlu2 %775 }
 0x435   : > { %779 = vst.msk [vmem:[%s1125_s19] sm:$0x1] %vm778_vm5, %v776_v33 }
 0x45a   : > { %v782_v34 = vpop.permute.xlu2 %781 }
 0x45b   : > { %785 = vst.msk [vmem:[%s1125_s19] sm:$0x1] %vm784_vm6, %v782_v34 }
 0x45c PF: > { %p22_p9 = scmp.ge.s32.totalorder %s1054_s30, 4   ;;  %s1187_s27 = smov %s953_s28 }
 0x45d   : > { %s1188_s28 = smov %s1063_s16  ;;  %s1189_s29 = smov %s1054_s30 }
 0x45e   :  { %24 = sbr.rel (!%p22_p9) target bundleno = 5 (0x5), region = 145 }

</bundles_post_ra>
